<compile_context>
chip_gen: v7x
topology: tpu7x:2x2x1
jax: 0.10.0
libtpu: 0.0.40
codegen_flags: <defaults>
</compile_context>

<pallas_src>
import numpy as np
import jax
import jax.numpy as jnp
from jax.experimental import pallas as pl
from jax.experimental.pallas import tpu as pltpu

EPS = 1e-5  # PyTorch GroupNorm default eps


def _silu(x):
    return x * jax.nn.sigmoid(x)


def _round_up(x, m):
    return ((x + m - 1) // m) * m


def _pad_last(a, target):
    pad = target - a.shape[-1]
    if pad == 0:
        return a
    widths = [(0, 0)] * (a.ndim - 1) + [(0, pad)]
    return jnp.pad(a, widths)


def _hw_config():
    """Generation-aware scoped-VMEM budget and preferred Cout tile width."""
    try:
        kind = jax.devices()[0].device_kind.lower()
    except Exception:
        kind = ""
    is_v5e = ("v5e" in kind) or ("v5 lite" in kind) or ("v5lite" in kind)
    big_vmem = any(t in kind for t in ("v4", "v5", "v6"))   # 128 MiB VMEM parts
    vmem = (100 * 1024 * 1024) if big_vmem else (48 * 1024 * 1024)  # conservative on v7x/unknown
    tc = 128 if is_v5e else 256                              # v5e MXU is 128-wide
    return vmem, tc


_VMEM_LIMIT, _TC_PREF = _hw_config()


def _pick_cout_tile(cout_padded):
    if cout_padded % _TC_PREF == 0:
        return _TC_PREF
    if cout_padded % 128 == 0:
        return 128
    return cout_padded


# --------------------------------------------------------------------------------------
# Kernel 1: GroupNorm statistics -> per-(batch, channel) scale / shift (stacked (2,C)).
#   scale = gamma / sqrt(var_g + eps),  shift = beta - mean_g * scale
# Centered two-pass variance in f32 (review correctness concern). Group reduce/expand via
# small (C,G)/(G,C) matmuls; padded channels have zero rows/cols so they contribute 0.
# TODO(synk): H-tile this kernel (Welford partials in scratch) for very large feature maps.
# --------------------------------------------------------------------------------------
def gn_stats_kernel(x_ref, g_reduce_ref, g_expand_ref, gb_ref, ss_ref):
    _, H, W, C = x_ref.shape
    x = x_ref[0].astype(jnp.float32).reshape(H * W, C)
    s = jnp.sum(x, axis=0, keepdims=True)                                   # (1, C)
    gmean = jnp.dot(s, g_reduce_ref[...], preferred_element_type=jnp.float32)       # (1, G)
    mean_c = jnp.dot(gmean, g_expand_ref[...], preferred_element_type=jnp.float32)  # (1, C)
    centered = x - mean_c
    ssq = jnp.sum(centered * centered, axis=0, keepdims=True)               # (1, C)
    gvar = jnp.dot(ssq, g_reduce_ref[...], preferred_element_type=jnp.float32)      # (1, G)
    ginv = jax.lax.rsqrt(gvar + EPS)
    inv_c = jnp.dot(ginv, g_expand_ref[...], preferred_element_type=jnp.float32)    # (1, C)
    gb = gb_ref[...]                                                        # (2, C)
    gamma = gb[0:1, :]
    beta = gb[1:2, :]
    scale = inv_c * gamma
    shift = beta - mean_c * scale
    ss_ref[0] = jnp.concatenate([scale, shift], axis=0)                     # (2, C)


def gn_scale_shift(x, gamma, beta, groups=32, c_true=None):
    """x: (N,H,W,C) (f32 or bf16, possibly lane-padded) -> (N,2,C) f32 [scale; shift]."""
    N, H, W, C = x.shape
    c_true = C if c_true is None else c_true
    G = groups
    Cg = c_true // G
    gid = np.full((C,), -1, dtype=np.int64)
    gid[:c_true] = np.arange(c_true) // Cg
    g_reduce = jnp.asarray(
        (gid[:, None] == np.arange(G)[None, :]).astype(np.float32) / (H * W * Cg))   # (C, G)
    g_expand = jnp.asarray(
        (np.arange(G)[:, None] == gid[None, :]).astype(np.float32))                  # (G, C)
    gb = jnp.zeros((2, C), jnp.float32)
    gb = gb.at[0, :c_true].set(gamma.astype(jnp.float32))
    gb = gb.at[1, :c_true].set(beta.astype(jnp.float32))
    return pl.pallas_call(
        gn_stats_kernel,
        out_shape=jax.ShapeDtypeStruct((N, 2, C), jnp.float32),
        grid=(N,),
        in_specs=[
            pl.BlockSpec((1, H, W, C), lambda i: (i, 0, 0, 0)),
            pl.BlockSpec((C, G), lambda i: (0, 0)),
            pl.BlockSpec((G, C), lambda i: (0, 0)),
            pl.BlockSpec((2, C), lambda i: (0, 0)),
        ],
        out_specs=pl.BlockSpec((1, 2, C), lambda i: (i, 0, 0)),
        compiler_params=pltpu.CompilerParams(
            dimension_semantics=("parallel",), vmem_limit_bytes=_VMEM_LIMIT),
    )(x, g_reduce, g_expand, gb)


# --------------------------------------------------------------------------------------
# Fused normalize -> SiLU -> in-register halo pad -> kx-im2col (bf16, cached in scratch
# across Cout tiles) -> 3x3 conv on the MXU (bf16 operands, f32 accumulation).
# --------------------------------------------------------------------------------------
def _fill_cols(x_ref, ss_ref, cols_ref):
    """Fill cols_ref (H+2, W, 3*Cin) bf16: affine-GN + SiLU, zero halo, 3 kx taps folded
    into the lane axis. Done once per batch element (under pl.when(j == 0))."""
    _, H, W, Cin = x_ref.shape
    ss = ss_ref[0]                                           # (2, Cin) f32
    sc = ss[0:1, :].reshape(1, 1, Cin)
    sh = ss[1:2, :].reshape(1, 1, Cin)
    x = x_ref[0].astype(jnp.float32)                         # (H, W, Cin)
    y = _silu(x * sc + sh).astype(jnp.bfloat16)              # bf16 cols (review item)
    zrow = jnp.zeros((1, W, Cin), jnp.bfloat16)
    zcol = jnp.zeros((H + 2, 1, Cin), jnp.bfloat16)
    yp = jnp.concatenate([zrow, y, zrow], axis=0)            # (H+2, W,   Cin)
    yp = jnp.concatenate([zcol, yp, zcol], axis=1)           # (H+2, W+2, Cin)
    cols_ref[...] = jnp.concatenate(
        [yp[:, 0:W, :], yp[:, 1:W + 1, :], yp[:, 2:W + 2, :]], axis=-1)     # (H+2, W, 3*Cin)


def _conv3x3_from_cols(cols, w_ref, H, W, K, tC):
    # 3 MXU matmuls with K = 3*Cin; accumulator seeded by the ky=0 dot (no zeros+add).
    acc = jnp.dot(cols[0:H].reshape(H * W, K), w_ref[0],
                  preferred_element_type=jnp.float32)
    for ky in (1, 2):
        acc = acc + jnp.dot(cols[ky:ky + H].reshape(H * W, K), w_ref[ky],
                            preferred_element_type=jnp.float32)
    return acc


def gn_conv_time_kernel(x_ref, ss_ref, w_ref, b_ref, o_ref, cols_ref):
    # o = conv3x3(SiLU(GN(x))) + (conv bias + time embedding), bias folded per batch.
    _, H, W, tC = o_ref.shape
    Cin = x_ref.shape[3]

    @pl.when(pl.program_id(1) == 0)
    def _():
        _fill_cols(x_ref, ss_ref, cols_ref)

    cols = cols_ref[...]
    acc = _conv3x3_from_cols(cols, w_ref, H, W, 3 * Cin, tC)
    acc = acc + b_ref[...]
    o_ref[0] = acc.reshape(H, W, tC).astype(o_ref.dtype)


def gn_conv_res_id_kernel(x_ref, ss_ref, w_ref, b_ref, res_ref, o_ref, cols_ref):
    # o = conv3x3(SiLU(GN(x))) + bias + residual  (identity residual, added in f32)
    _, H, W, tC = o_ref.shape
    Cin = x_ref.shape[3]

    @pl.when(pl.program_id(1) == 0)
    def _():
        _fill_cols(x_ref, ss_ref, cols_ref)

    cols = cols_ref[...]
    acc = _conv3x3_from_cols(cols, w_ref, H, W, 3 * Cin, tC)
    acc = acc + b_ref[...] + res_ref[0].astype(jnp.float32).reshape(H * W, tC)
    o_ref[0] = acc.reshape(H, W, tC).astype(o_ref.dtype)


def gn_conv_res_proj_kernel(x_ref, ss_ref, w_ref, b_ref, res_ref, rw_ref, o_ref, cols_ref):
    # o = conv3x3(SiLU(GN(x))) + bias + residual @ Wres  (1x1 projection fused in)
    _, H, W, tC = o_ref.shape
    Cin = x_ref.shape[3]
    Cres = res_ref.shape[3]

    @pl.when(pl.program_id(1) == 0)
    def _():
        _fill_cols(x_ref, ss_ref, cols_ref)

    cols = cols_ref[...]
    acc = _conv3x3_from_cols(cols, w_ref, H, W, 3 * Cin, tC)
    r = res_ref[0].reshape(H * W, Cres).astype(jnp.bfloat16)
    acc = acc + jnp.dot(r, rw_ref[...], preferred_element_type=jnp.float32)
    acc = acc + b_ref[...]
    o_ref[0] = acc.reshape(H, W, tC).astype(o_ref.dtype)


# --------------------------------------------------------------------------------------
# Pallas-call wrappers: grid = (N, Cout_tiles); N "parallel" (2 TCs on v7x need N>=2),
# Cout axis "arbitrary" so the bf16 cols scratch is reused across Cout tiles.
# --------------------------------------------------------------------------------------
def fused_gn_silu_conv3x3_time(x, ss, w_bf16, bias_per_batch, *, out_dtype):
    # x: (N,H,W,Cin); ss: (N,2,Cin) f32; w_bf16: (3,3*Cin,Cout_p) bf16;
    # bias_per_batch: (N,Cout_p) f32 (= conv bias + time embedding).
    N, H, W, Cin = x.shape
    Cout = w_bf16.shape[-1]
    tC = _pick_cout_tile(Cout)
    return pl.pallas_call(
        gn_conv_time_kernel,
        out_shape=jax.ShapeDtypeStruct((N, H, W, Cout), out_dtype),
        grid=(N, Cout // tC),
        in_specs=[
            pl.BlockSpec((1, H, W, Cin), lambda n, j: (n, 0, 0, 0)),
            pl.BlockSpec((1, 2, Cin), lambda n, j: (n, 0, 0)),
            pl.BlockSpec((3, 3 * Cin, tC), lambda n, j: (0, 0, j)),
            pl.BlockSpec((1, tC), lambda n, j: (n, j)),
        ],
        out_specs=pl.BlockSpec((1, H, W, tC), lambda n, j: (n, 0, 0, j)),
        scratch_shapes=[pltpu.VMEM((H + 2, W, 3 * Cin), jnp.bfloat16)],
        compiler_params=pltpu.CompilerParams(
            dimension_semantics=("parallel", "arbitrary"),
            vmem_limit_bytes=_VMEM_LIMIT),
    )(x, ss, w_bf16, bias_per_batch)


def fused_gn_silu_conv3x3_residual(x, ss, w_bf16, bias, res, res_w_bf16, *, out_dtype):
    # x: (N,H,W,Cin); bias: (1,Cout_p) f32; res: (N,H,W,Cres);
    # res_w_bf16: (Cres,Cout_p) bf16 or None (identity residual, res pre-padded to Cout_p).
    N, H, W, Cin = x.shape
    Cout = w_bf16.shape[-1]
    tC = _pick_cout_tile(Cout)
    grid = (N, Cout // tC)
    common_specs = [
        pl.BlockSpec((1, H, W, Cin), lambda n, j: (n, 0, 0, 0)),
        pl.BlockSpec((1, 2, Cin), lambda n, j: (n, 0, 0)),
        pl.BlockSpec((3, 3 * Cin, tC), lambda n, j: (0, 0, j)),
        pl.BlockSpec((1, tC), lambda n, j: (0, j)),
    ]
    out_spec = pl.BlockSpec((1, H, W, tC), lambda n, j: (n, 0, 0, j))
    scratch = [pltpu.VMEM((H + 2, W, 3 * Cin), jnp.bfloat16)]
    cp = pltpu.CompilerParams(dimension_semantics=("parallel", "arbitrary"),
                              vmem_limit_bytes=_VMEM_LIMIT)
    if res_w_bf16 is None:
        return pl.pallas_call(
            gn_conv_res_id_kernel,
            out_shape=jax.ShapeDtypeStruct((N, H, W, Cout), out_dtype),
            grid=grid,
            in_specs=common_specs + [
                pl.BlockSpec((1, H, W, tC), lambda n, j: (n, 0, 0, j)),
            ],
            out_specs=out_spec, scratch_shapes=scratch, compiler_params=cp,
        )(x, ss, w_bf16, bias, res)
    Cres = res.shape[-1]
    return pl.pallas_call(
        gn_conv_res_proj_kernel,
        out_shape=jax.ShapeDtypeStruct((N, H, W, Cout), out_dtype),
        grid=grid,
        in_specs=common_specs + [
            pl.BlockSpec((1, H, W, Cres), lambda n, j: (n, 0, 0, 0)),
            pl.BlockSpec((Cres, tC), lambda n, j: (0, j)),
        ],
        out_specs=out_spec, scratch_shapes=scratch, compiler_params=cp,
    )(x, ss, w_bf16, bias, res, res_w_bf16)


# --------------------------------------------------------------------------------------
# Module-level wrapper (mirrors the PyTorch UNET_ResidualBlock)
# --------------------------------------------------------------------------------------
class UNetResidualBlockPallas:
    def __init__(self, in_channels, out_channels, n_time=1280, key=None):
        self.in_channels = in_channels
        self.out_channels = out_channels
        self.n_time = n_time
        ks = jax.random.split(key, 12)
        p = {}
        p["gn1_gamma"] = 1.0 + 0.1 * jax.random.normal(ks[0], (in_channels,), jnp.float32)
        p["gn1_beta"] = 0.1 * jax.random.normal(ks[1], (in_channels,), jnp.float32)
        p["conv_f_w"] = jax.random.normal(ks[2], (3, 3, in_channels, out_channels),
                                          jnp.float32) / np.sqrt(9 * in_channels)
        p["conv_f_b"] = 0.1 * jax.random.normal(ks[3], (out_channels,), jnp.float32)
        p["lin_t_w"] = jax.random.normal(ks[4], (n_time, out_channels),
                                         jnp.float32) / np.sqrt(n_time)
        p["lin_t_b"] = 0.1 * jax.random.normal(ks[5], (out_channels,), jnp.float32)
        p["gn2_gamma"] = 1.0 + 0.1 * jax.random.normal(ks[6], (out_channels,), jnp.float32)
        p["gn2_beta"] = 0.1 * jax.random.normal(ks[7], (out_channels,), jnp.float32)
        p["conv_m_w"] = jax.random.normal(ks[8], (3, 3, out_channels, out_channels),
                                          jnp.float32) / np.sqrt(9 * out_channels)
        p["conv_m_b"] = 0.1 * jax.random.normal(ks[9], (out_channels,), jnp.float32)
        if in_channels != out_channels:
            p["res_w"] = jax.random.normal(ks[10], (in_channels, out_channels),
                                           jnp.float32) / np.sqrt(in_channels)
            p["res_b"] = 0.1 * jax.random.normal(ks[11], (out_channels,), jnp.float32)
        self.params = p

    def __call__(self, feature_nchw, time):
        p = self.params
        Cin, Cout = self.in_channels, self.out_channels
        x = jnp.transpose(feature_nchw, (0, 2, 3, 1)).astype(jnp.float32)   # NCHW -> NHWC
        Cout_p = _round_up(Cout, 128)                                       # lane-dense outputs
        pad_c = Cout_p - Cout

        # ---- Pass 1: GN stats (tiny kernel), then fused GN+SiLU+conv_feature(+bias+time).
        ss1 = gn_scale_shift(x, p["gn1_gamma"], p["gn1_beta"])              # (N,2,Cin) f32
        t_emb = _silu(time.astype(jnp.float32)) @ p["lin_t_w"] + p["lin_t_b"]   # (N,Cout), plain JAX
        bias1 = _pad_last(t_emb + p["conv_f_b"][None, :], Cout_p)           # time folded into bias
        w1 = _pad_last(p["conv_f_w"].reshape(3, 3 * Cin, Cout), Cout_p).astype(jnp.bfloat16)
        merged = fused_gn_silu_conv3x3_time(x, ss1, w1, bias1,
                                            out_dtype=jnp.bfloat16)         # (N,H,W,Cout_p) bf16

        # ---- Pass 2: GN stats on bf16 merged, then fused GN+SiLU+conv_merged+bias+residual.
        ss2 = gn_scale_shift(merged, p["gn2_gamma"], p["gn2_beta"], c_true=Cout)
        w2 = jnp.pad(p["conv_m_w"], ((0, 0), (0, 0), (0, pad_c), (0, pad_c)))
        w2 = w2.reshape(3, 3 * Cout_p, Cout_p).astype(jnp.bfloat16)
        if Cin == Cout:
            bias2 = _pad_last(p["conv_m_b"][None, :], Cout_p)
            res = _pad_last(x, Cout_p)                                       # identity residual (f32)
            out_p = fused_gn_silu_conv3x3_residual(merged, ss2, w2, bias2, res, None,
                                                   out_dtype=jnp.float32)
        else:
            bias2 = _pad_last((p["conv_m_b"] + p["res_b"])[None, :], Cout_p)
            rw = _pad_last(p["res_w"], Cout_p).astype(jnp.bfloat16)          # (Cin, Cout_p)
            out_p = fused_gn_silu_conv3x3_residual(merged, ss2, w2, bias2,
                                                   x.astype(jnp.bfloat16), rw,
                                                   out_dtype=jnp.float32)
        out = out_p[..., :Cout]                                              # drop lane padding
        return jnp.transpose(out, (0, 3, 1, 2))                              # NHWC -> NCHW

    # Pure-JAX NCHW f32 reference mirroring the PyTorch forward, for verification.
    def reference(self, feature, time):
        p = self.params

        def gn(x, g, b, groups=32):
            N, C, H, W = x.shape
            xg = x.reshape(N, groups, -1)
            mean = xg.mean(axis=2, keepdims=True)
            var = ((xg - mean) ** 2).mean(axis=2, keepdims=True)
            xn = ((xg - mean) / jnp.sqrt(var + EPS)).reshape(N, C, H, W)
            return xn * g[None, :, None, None] + b[None, :, None, None]

        def conv(x, w_hwio, b, pad):
            w_oihw = jnp.transpose(w_hwio, (3, 2, 0, 1))
            y = jax.lax.conv_general_dilated(
                x, w_oihw, (1, 1), [(pad, pad), (pad, pad)],
                dimension_numbers=("NCHW", "OIHW", "NCHW"))
            return y + b[None, :, None, None]

        h = _silu(gn(feature, p["gn1_gamma"], p["gn1_beta"]))
        h = conv(h, p["conv_f_w"], p["conv_f_b"], 1)
        t = _silu(time) @ p["lin_t_w"] + p["lin_t_b"]
        merged = h + t[:, :, None, None]
        m = _silu(gn(merged, p["gn2_gamma"], p["gn2_beta"]))
        m = conv(m, p["conv_m_w"], p["conv_m_b"], 1)
        if self.in_channels == self.out_channels:
            res = feature
        else:
            w = jnp.transpose(p["res_w"], (1, 0))[:, :, None, None]  # (Cout, Cin, 1, 1)
            res = jax.lax.conv_general_dilated(
                feature, w, (1, 1), [(0, 0), (0, 0)],
                dimension_numbers=("NCHW", "OIHW", "NCHW"))
            res = res + p["res_b"][None, :, None, None]
        return m + res


if __name__ == "__main__":
    key = jax.random.PRNGKey(0)
    k_param, k_param2, k_feat, k_time = jax.random.split(key, 4)

    N, Cin, Cout, H, W, n_time = 2, 32, 64, 16, 16, 64
    feature = jax.random.normal(k_feat, (N, Cin, H, W), jnp.float32)   # NCHW, like PyTorch
    time = jax.random.normal(k_time, (N, n_time), jnp.float32)

    # bf16 MXU operands, bf16 `merged` intermediate, f32 accumulation / GN statistics
    # -> slightly looser tolerance than pure f32.
    TOL = 5e-2

    # Case 1: Cin != Cout  -> fused 1x1-projection residual path.
    block = UNetResidualBlockPallas(Cin, Cout, n_time=n_time, key=k_param)
    out = jax.block_until_ready(block(feature, time))
    assert out.shape == (N, Cout, H, W)
    ref = block.reference(feature, time)
    np.testing.assert_allclose(np.asarray(out), np.asarray(ref), rtol=TOL, atol=TOL)

    # Case 2: Cin == Cout  -> identity residual path.
    block2 = UNetResidualBlockPallas(Cout, Cout, n_time=n_time, key=k_param2)
    feature2 = jax.random.normal(k_feat, (N, Cout, H, W), jnp.float32)
    out2 = jax.block_until_ready(block2(feature2, time))
    assert out2.shape == (N, Cout, H, W)
    ref2 = block2.reference(feature2, time)
    np.testing.assert_allclose(np.asarray(out2), np.asarray(ref2), rtol=TOL, atol=TOL)

    print("KERNEL_OK")
</pallas_src>

<mosaic_0001>
module attributes {stable_mosaic.version = 11 : i64} {
  func.func @gn_stats_kernel(%arg0: i32, %arg1: memref<1x16x16x32xf32, #tpu.memory_space<vmem>>, %arg2: memref<32x32xf32, #tpu.memory_space<vmem>>, %arg3: memref<32x32xf32, #tpu.memory_space<vmem>>, %arg4: memref<2x32xf32, #tpu.memory_space<vmem>>, %arg5: memref<1x2x32xf32, #tpu.memory_space<vmem>>) attributes {dimension_semantics = [#tpu.dimension_semantics<parallel>], iteration_bounds = array<i64: 2>, scalar_prefetch = 0 : i64, scratch_operands = 0 : i64, tpu.core_type = #tpu.core_type<tc>, window_params = [{transform_indices = @transform_0, window_bounds = array<i64: 1, 16, 16, 32>}, {pipeline_mode = #tpu.pipeline_mode<synchronous>, transform_indices = @transform_1, window_bounds = array<i64: 32, 32>}, {pipeline_mode = #tpu.pipeline_mode<synchronous>, transform_indices = @transform_2, window_bounds = array<i64: 32, 32>}, {pipeline_mode = #tpu.pipeline_mode<synchronous>, transform_indices = @transform_3, window_bounds = array<i64: 2, 32>}, {transform_indices = @transform_4, window_bounds = array<i64: 1, 2, 32>}]} {
    %c0 = arith.constant 0 : index
    %c0_0 = arith.constant 0 : index
    %c0_1 = arith.constant 0 : index
    %c0_2 = arith.constant 0 : index
    %0 = vector.load %arg1[%c0, %c0_0, %c0_1, %c0_2] : memref<1x16x16x32xf32, #tpu.memory_space<vmem>>, vector<1x16x16x32xf32>
    %1 = vector.shape_cast %0 : vector<1x16x16x32xf32> to vector<16x16x32xf32>
    %2 = vector.shape_cast %1 : vector<16x16x32xf32> to vector<256x32xf32>
    %cst = arith.constant dense<0.000000e+00> : vector<32xf32>
    %3 = vector.multi_reduction <add>, %2, %cst [0] : vector<256x32xf32> to vector<32xf32>
    %4 = vector.shape_cast %3 : vector<32xf32> to vector<1x32xf32>
    %c0_3 = arith.constant 0 : index
    %c0_4 = arith.constant 0 : index
    %5 = vector.load %arg2[%c0_3, %c0_4] : memref<32x32xf32, #tpu.memory_space<vmem>>, vector<32x32xf32>
    %cst_5 = arith.constant dense<0.000000e+00> : vector<1x32xf32>
    %6 = tpu.matmul %4, %5, %cst_5 {dimension_numbers = #tpu.dot_dimension_numbers<[1], [0], [0], [1], [0, 0, 1, 1], [], []>} : vector<1x32xf32>, vector<32x32xf32>, vector<1x32xf32> -> vector<1x32xf32>
    %c0_6 = arith.constant 0 : index
    %c0_7 = arith.constant 0 : index
    %7 = vector.load %arg3[%c0_6, %c0_7] : memref<32x32xf32, #tpu.memory_space<vmem>>, vector<32x32xf32>
    %cst_8 = arith.constant dense<0.000000e+00> : vector<1x32xf32>
    %8 = tpu.matmul %6, %7, %cst_8 {dimension_numbers = #tpu.dot_dimension_numbers<[1], [0], [0], [1], [0, 0, 1, 1], [], []>} : vector<1x32xf32>, vector<32x32xf32>, vector<1x32xf32> -> vector<1x32xf32>
    %9 = vector.broadcast %8 : vector<1x32xf32> to vector<256x32xf32>
    %10 = arith.subf %2, %9 : vector<256x32xf32>
    %11 = arith.mulf %10, %10 : vector<256x32xf32>
    %cst_9 = arith.constant dense<0.000000e+00> : vector<32xf32>
    %12 = vector.multi_reduction <add>, %11, %cst_9 [0] : vector<256x32xf32> to vector<32xf32>
    %13 = vector.shape_cast %12 : vector<32xf32> to vector<1x32xf32>
    %c0_10 = arith.constant 0 : index
    %c0_11 = arith.constant 0 : index
    %14 = vector.load %arg2[%c0_10, %c0_11] : memref<32x32xf32, #tpu.memory_space<vmem>>, vector<32x32xf32>
    %cst_12 = arith.constant dense<0.000000e+00> : vector<1x32xf32>
    %15 = tpu.matmul %13, %14, %cst_12 {dimension_numbers = #tpu.dot_dimension_numbers<[1], [0], [0], [1], [0, 0, 1, 1], [], []>} : vector<1x32xf32>, vector<32x32xf32>, vector<1x32xf32> -> vector<1x32xf32>
    %cst_13 = arith.constant 9.99999974E-6 : f32
    %16 = vector.broadcast %cst_13 : f32 to vector<1x32xf32>
    %17 = arith.addf %15, %16 : vector<1x32xf32>
    %18 = math.rsqrt %17 : vector<1x32xf32>
    %c0_14 = arith.constant 0 : index
    %c0_15 = arith.constant 0 : index
    %19 = vector.load %arg3[%c0_14, %c0_15] : memref<32x32xf32, #tpu.memory_space<vmem>>, vector<32x32xf32>
    %cst_16 = arith.constant dense<0.000000e+00> : vector<1x32xf32>
    %20 = tpu.matmul %18, %19, %cst_16 {dimension_numbers = #tpu.dot_dimension_numbers<[1], [0], [0], [1], [0, 0, 1, 1], [], []>} : vector<1x32xf32>, vector<32x32xf32>, vector<1x32xf32> -> vector<1x32xf32>
    %c0_17 = arith.constant 0 : index
    %c0_18 = arith.constant 0 : index
    %21 = vector.load %arg4[%c0_17, %c0_18] : memref<2x32xf32, #tpu.memory_space<vmem>>, vector<2x32xf32>
    %22 = vector.extract_strided_slice %21 {offsets = [0, 0], sizes = [1, 32], strides = [1, 1]} : vector<2x32xf32> to vector<1x32xf32>
    %23 = vector.extract_strided_slice %21 {offsets = [1, 0], sizes = [1, 32], strides = [1, 1]} : vector<2x32xf32> to vector<1x32xf32>
    %24 = arith.mulf %20, %22 : vector<1x32xf32>
    %25 = arith.mulf %8, %24 : vector<1x32xf32>
    %26 = arith.subf %23, %25 : vector<1x32xf32>
    %27 = tpu.concatenate %24, %26 in 0 : vector<1x32xf32>, vector<1x32xf32> -> vector<2x32xf32>
    %c0_19 = arith.constant 0 : index
    %c0_20 = arith.constant 0 : index
    %c0_21 = arith.constant 0 : index
    %28 = vector.load %arg5[%c0_19, %c0_20, %c0_21] : memref<1x2x32xf32, #tpu.memory_space<vmem>>, vector<1x2x32xf32>
    %29 = vector.shape_cast %28 : vector<1x2x32xf32> to vector<2x32xf32>
    %30 = vector.shape_cast %27 : vector<2x32xf32> to vector<1x2x32xf32>
    tpu.vector_store %arg5[%c0_19, %c0_20, %c0_21], %30 {strides = array<i32>} : memref<1x2x32xf32, #tpu.memory_space<vmem>>, vector<1x2x32xf32>,
    return
  }
  func.func @transform_0(%arg0: i32) -> (i32, i32, i32, i32) {
    %c0_i32 = arith.constant 0 : i32
    %c0_i32_0 = arith.constant 0 : i32
    %c0_i32_1 = arith.constant 0 : i32
    %c0_i32_2 = arith.constant 0 : i32
    return %arg0, %c0_i32, %c0_i32_0, %c0_i32_1 : i32, i32, i32, i32
  }
  func.func @transform_1(%arg0: i32) -> (i32, i32) {
    %c0_i32 = arith.constant 0 : i32
    %c0_i32_0 = arith.constant 0 : i32
    %c0_i32_1 = arith.constant 0 : i32
    return %c0_i32, %c0_i32_0 : i32, i32
  }
  func.func @transform_2(%arg0: i32) -> (i32, i32) {
    %c0_i32 = arith.constant 0 : i32
    %c0_i32_0 = arith.constant 0 : i32
    %c0_i32_1 = arith.constant 0 : i32
    return %c0_i32, %c0_i32_0 : i32, i32
  }
  func.func @transform_3(%arg0: i32) -> (i32, i32) {
    %c0_i32 = arith.constant 0 : i32
    %c0_i32_0 = arith.constant 0 : i32
    %c0_i32_1 = arith.constant 0 : i32
    return %c0_i32, %c0_i32_0 : i32, i32
  }
  func.func @transform_4(%arg0: i32) -> (i32, i32, i32) {
    %c0_i32 = arith.constant 0 : i32
    %c0_i32_0 = arith.constant 0 : i32
    %c0_i32_1 = arith.constant 0 : i32
    return %arg0, %c0_i32, %c0_i32_0 : i32, i32, i32
  }
}

</mosaic_0001>

<bundles_post_ra>
// kernel: tpu_custom_call.1
= control target key start
LH: loop header
LB: loop body
LE: loop exit
PB: predicated region body
PF: predicated region fallthrough
CT: control target
= control target key end

     0   :  { %9 = vsyncpa [#allocation3], 0  ;;  %s1820_s0 = inlined_call_operand.hbm [shape: f32[2,16,16,32], index: 0, kind: input, shape index: {}]   ;;  %s1821_s1 = inlined_call_operand.hbm [shape: f32[32,32], index: 1, kind: input, shape index: {}]   ;;  %s1822_s2 = inlined_call_operand.hbm [shape: f32[32,32], index: 2, kind: input, shape index: {}]   ;;  %s1823_s3 = inlined_call_operand.vmem [shape: f32[2,32], index: 3, kind: input, shape index: {}]   ;;  %s1824_s4 = inlined_call_operand.hbm [shape: f32[2,2,32], index: 4, kind: output, shape index: {}]  }
   0x1   :  { %11 = vsyncpa [#allocation3 + $0x1], 0 }
   0x2   :  { %12 = vsyncpa [#allocation6], 0 }
   0x3   :  { %13 = vsyncpa [#allocation4], 0 }
   0x4   :  { %15 = vsyncpa [#allocation4 + $0x1], 0  ;;  %s1275_s15 = smov 0   ;;  %s1277_s16 = smov 0  }
   0x5   :  { %s1279_s17 = smov 0   ;;  %s1281_s18 = smov 0  }
   0x6 LB: > { %s1296_s19 = sadd.s32 4294967295, %s1239_s18   ;;  %s899_s20 = sadd.s32 4294967294, %s1239_s18   ;;  %s1239_s18 = sphi %s1281_s18, %s1844_s18   ;;  %s1235_s17 = sphi %s1279_s17, %s1843_s17   ;;  %s1231_s16 = sphi %s1277_s16, %s1842_s16   ;;  %s1227_s15 = sphi %s1275_s15, %s1841_s15  }
   0x7   : > { %p41_p0 = scmp.ne.s32.totalorder %s1231_s16, %s1227_s15  ;;  %p1825_p1 = scmp.eq.s32.totalorder %s1296_s19, 0 }
   0x8   : > { %p134_p3 = scmp.eq.s32.totalorder %s899_s20, 1  ;;  %p900_p5 = scmp.ge.s32.totalorder %s1239_s18, 1 }
   0x9   : > { %p1305_p4 = por %p1825_p1, %p41_p0  ;;  %p141_p7 = scmp.lt.s32.totalorder %s1239_s18, 3 }
   0xa   : > { %p1310_p6 = por %p134_p3, %p41_p0  ;;  %s1241_s24 = smov [#allocation5]  }
   0xb   : > { %s1828_s21 = scalar_select %p1305_p4, 1, 0 }
   0xc   : > { %s1829_s22 = scalar_select %p1310_p6, 1, 0 }
   0xd   : > { %p1315_p8 = pnand %p900_p5, %p141_p7  ;;  %s153_s25 = sshll.u32 %s1241_s24, 4  ;;  %s1319_s25 = int_to_ptr.vmem [resolvable:$true] %s153_s25 }
   0xe   : > { %s1242_s27 = smov [#allocation7]   ;;  %s1083_s5 = scalar_lea.hbm %s1821_s1, 512 }
   0xf   : > { %p1021_p9 = pneg %p1315_p8  ;;  %s166_s28 = sshll.u32 %s1242_s27, 4  ;;  %s1330_s28 = int_to_ptr.vmem [resolvable:$true] %s166_s28 }
  0x10   : > { %p1084_p12 = scmp.ne.s32.totalorder %s1821_s1, %s1083_s5  ;;  %p1090_p5 = scmp.lt.u32.totalorder %s1083_s5, %s1821_s1 }
  0x11   : > { %p1326_p11 = pnand %p1021_p9, %p1825_p1 }
  0x13   : > { %p1085_p13 = pneg %p1326_p11 }
  0x15   : > { %p1086_p0 = pnand %p1085_p13, %p1084_p12 }
  0x17   : > { %p1087_p3 = pneg %p1086_p0 }
  0x19   : > { %p1092_p7 = pnand %p1090_p5, %p1087_p3 }
  0x1b   : > { %1095 = shalt.err (!%p1092_p7)
}
  0x1c   : > { %s1096_s10 = scalar_lea.vmem %s1319_s25, 512  ;;  %p1104_p2 = scmp.lt.s32.totalorder %s1319_s25, %s1319_s25 }
  0x1d   : > { %p1097_p9 = scmp.ne.s32.totalorder %s1319_s25, %s1096_s10  ;;  %p1105_p12 = scmp.lt.s32.totalorder %s1096_s10, %s1096_s10 }
  0x1f   : > { %p1099_p10 = pnand %p1097_p9, %p1085_p13  ;;  %p1106_p0 = por %p1105_p12, %p1104_p2 }
  0x21   : > { %p1100_p1 = pneg %p1099_p10 }
  0x23   : > { %p1107_p6 = pnand %p1106_p0, %p1100_p1 }
  0x25   : > { %1110 = shalt.err (!%p1107_p6)
}
  0x26   : > { %s1243_s11 = smov 128   ;;  %s1244_s12 = smov 8  }
  0x27   : > { %1024 = dma.hbm_to_vmem [thread:$0]  (!%p1326_p11), %s1821_s1, 512, %s1319_s25, [#allocation6], %s1243_s11, %s1243_s11, %s1244_s12  }
  0x28   : > { %s1111_s27 = scalar_lea.hbm %s1822_s2, 512 }
  0x29   : > { %p1112_p1 = scmp.ne.s32.totalorder %s1822_s2, %s1111_s27  ;;  %p1118_p10 = scmp.lt.u32.totalorder %s1111_s27, %s1822_s2 }
  0x2b   : > { %p1114_p2 = pnand %p1112_p1, %p1085_p13 }
  0x2d   : > { %p1115_p6 = pneg %p1114_p2 }
  0x2f   : > { %p1120_p3 = pnand %p1118_p10, %p1115_p6 }
  0x31   : > { %1123 = shalt.err (!%p1120_p3)
}
  0x32   : > { %s1124_s25 = scalar_lea.vmem %s1330_s28, 512  ;;  %p1132_p12 = scmp.lt.s32.totalorder %s1330_s28, %s1330_s28 }
  0x33   : > { %p1125_p5 = scmp.ne.s32.totalorder %s1330_s28, %s1124_s25  ;;  %p1133_p0 = scmp.lt.s32.totalorder %s1124_s25, %s1124_s25 }
  0x35   : > { %p1127_p7 = pnand %p1125_p5, %p1085_p13  ;;  %p1134_p1 = por %p1133_p0, %p1132_p12 }
  0x37   : > { %p1128_p9 = pneg %p1127_p7 }
  0x39   : > { %p1135_p2 = pnand %p1134_p1, %p1128_p9 }
  0x3b   : > { %1138 = shalt.err (!%p1135_p2)
}
  0x3c   : > { %1027 = dma.hbm_to_vmem [thread:$0]  (!%p1326_p11), %s1822_s2, 512, %s1330_s28, [#allocation6], %s1243_s11, %s1243_s11, %s1244_s12  }
  0x3d   : > { %s1391_s26 = sadd.s32 1, %s1239_s18   ;;  %s28_s9 = sadd.s32 1, %s1235_s17 }
  0x3e   : > { %s25_s10 = ssub.s32 %s1239_s18, %s1391_s26  ;;  %p35_p13 = scmp.ne.s32.totalorder %s1235_s17, %s1231_s16 }
  0x3f   : > { %p26_p6 = scmp.eq.s32.totalorder %s25_s10, 0  ;;  %p36_p10 = scmp.eq.s32.totalorder %s1239_s18, 0 }
  0x40   : > { %p1832_p3 = scmp.eq.s32.totalorder %s1296_s19, 1  ;;  %p1038_p7 = scmp.lt.s32.totalorder %s1239_s18, 2 }
  0x41   : > { %s1407_s14 = scalar_select %p26_p6, %s1235_s17, %s28_s9  }
  0x42   : > { %p1401_p5 = por %p1832_p3, %p35_p13  ;;  %p37_p9 = por %p36_p10, %p35_p13 }
  0x43   : > { %s183_s20 = sand.u32 1, %s1235_s17   ;;  %s920_s28 = sshll.u32 %s1239_s18, 12 }
  0x44   : > { %s1833_s13 = scalar_select %p1401_p5, 1, 0 }
  0x45   : > { %s904_s24 = sshll.u32 %s183_s20, 8  ;;  %s1414_s30 = scalar_lea.hbm %s1820_s0, %s920_s28 }
  0x46   : > { %s187_s5 = scalar_lea.vmem [#allocation2], %s904_s24  ;;  %p1418_p11 = pnand %p1038_p7, %p37_p9 }
  0x47   : > { %s194_s6 = sshll.u32 %s187_s5, 4  ;;  %s1422_s7 = scalar_lea.sflag [#allocation3], %s183_s20  ;;  %s1416_s6 = int_to_ptr.vmem [resolvable:$true] %s194_s6 }
  0x48   : > { %s1139_s8 = scalar_lea.hbm %s1414_s30, 4096  ;;  %p1141_p0 = pneg %p1418_p11 }
  0x49   : > { %p1140_p12 = scmp.ne.s32.totalorder %s1414_s30, %s1139_s8  ;;  %s1144_s24 = scalar_lea.hbm %s1820_s0, 8192 }
  0x4a   : > { %p1145_p13 = scmp.lt.u32.totalorder %s1414_s30, %s1820_s0  ;;  %p1146_p6 = scmp.lt.u32.totalorder %s1144_s24, %s1139_s8 }
  0x4b   : > { %p1142_p1 = pnand %p1141_p0, %p1140_p12  ;;  %p1148_p3 = scmp.lt.u32.totalorder %s1139_s8, %s1414_s30 }
  0x4c   : > { %p1147_p10 = por %p1146_p6, %p1145_p13 }
  0x4d   : > { %p1143_p2 = pneg %p1142_p1 }
  0x4e   : > { %p1149_p7 = por %p1148_p3, %p1147_p10 }
  0x50   : > { %p1150_p9 = pnand %p1149_p7, %p1143_p2 }
  0x52   : > { %1153 = shalt.err (!%p1150_p9)
}
  0x53   : > { %s1154_s20 = scalar_lea.vmem %s1416_s6, 4096  ;;  %s1245_s29 = smov [#allocation2]  }
  0x54   : > { %p1155_p12 = scmp.ne.s32.totalorder %s1416_s6, %s1154_s20  ;;  %s1159_s5 = sshll.u32 %s1245_s29, 4  ;;  %s1160_s5 = int_to_ptr.vmem [resolvable:$false] %s1159_s5 }
  0x55   : > { %s1161_s9 = scalar_lea.vmem %s1160_s5, 8192  ;;  %p1162_p4 = scmp.lt.s32.totalorder %s1416_s6, %s1160_s5 }
  0x56   : > { %p1157_p1 = pnand %p1155_p12, %p1141_p0  ;;  %p1163_p13 = scmp.lt.s32.totalorder %s1161_s9, %s1154_s20 }
  0x58   : > { %p1158_p5 = pneg %p1157_p1  ;;  %p1164_p6 = por %p1163_p13, %p1162_p4 }
  0x5a   : > { %p1165_p10 = pnand %p1164_p6, %p1158_p5 }
  0x5c   : > { %1168 = shalt.err (!%p1165_p10)
}
  0x5d   : > { %1031 = dma.hbm_to_vmem [thread:$0]  (!%p1418_p11), %s1414_s30, 4096, %s1416_s6, %s1422_s7, %s1243_s11, %s1243_s11, %s1244_s12  }
  0x5e   : > { %206 = sbr.rel (%p1315_p8) target bundleno = 1148 (0x47c), region = 36  ;;  %s1456_s8 = sand.u32 (!%p1315_p8), 1, %s1231_s16  }
  0x5f   : > { %s908_s10 = sshll.u32 (!%p1315_p8), %s1456_s8, 8  ;;  %s209_s24 = scalar_lea.sflag (!%p1315_p8), [#allocation3], %s1456_s8 }
  0x60   : > { %s1460_s28 = scalar_lea.vmem (!%p1315_p8), [#allocation2], %s908_s10  ;;  %p1835_p4 = scmp.ne.s32.totalorder (!%p1315_p8), %s1828_s21, 0 }
  0x65   : > { %1214 = dma.done.wait (%p1835_p4), %s209_s24, 4096  }
  0x66   : > { %1216 = vsyncadd (%p1835_p4), %s209_s24, 4294963200  ;;  %p1836_p5 = scmp.eq.s32.totalorder %s1296_s19, 0 }
  0x68   : > { %1218 = dma.done.wait (%p1836_p5), [#allocation6], 1024   ;;  %p1837_p8 = pmov %p1836_p5 }
  0x69   : > { %v1246_v0 = vmov 0.0|0.0   ;;  %vm1247_vm0 = vmmov 0   ;;  %v1248_v1 = vmov 0.0   ;;  %vm277_vm1 = vcmask 261120   ;;  %v347_v2 = vld [vmem:[#allocation5] sm:$0xff]  ;;  %v348_v3 = vld [vmem:[#allocation5 + $0x8] sm:$0xff] }
  0x6a   : > { %1220 = vsyncadd (%p1837_p8), [#allocation6], 4294966272  ;;  %985 = vmatprep.subr.bf16.mxu0 %v1246_v0  ;;  %949 = vmatprep.mubr.msk.f32.mxu0 %vm1247_vm0, %v1248_v1  ;;  %v349_v4 = vld [vmem:[#allocation5 + $0x10] sm:$0xff]  ;;  %v1476_v5 = vpack.c.bf16 %v348_v3, %v347_v2  ;;  %v350_v6 = vld [vmem:[#allocation5 + $0x18] sm:$0xff]  ;;  %s911_s11 = sshll.u32 %s1456_s8, 1  ;;  %s917_s12 = sshll.u32 %s1296_s19, 5 }
  0x6b   : > { %991 = vmatprep.subr.bf16.mxu1 %v1246_v0  ;;  %960 = vmatprep.mubr.msk.f32.mxu1 %vm1247_vm0, %v1248_v1  ;;  %v1479_v7 = vld [vmem:[%s1460_s28] sm:$0xff]  ;;  %v1482_v8 = vld [vmem:[%s1460_s28 + $0x8] sm:$0xff]  ;;  %v1485_v9 = vld [vmem:[%s1460_s28 + $0x10] sm:$0xff]  ;;  %v1495_v13 = vpack.c.bf16 %v350_v6, %v349_v4  ;;  %s244_s30 = scalar_lea.vmem [#allocation8], %s911_s11  ;;  %vm792_vm2 = vcmask 1040384   ;;  %vm794_vm3 = vcmask 254976   ;;  %s1776_s27 = scalar_lea.hbm %s1824_s4, %s917_s12 }
  0x6c   : > { %v1488_v10 = vld [vmem:[%s1460_s28 + $0x18] sm:$0xff]  ;;  %v278_v11 = vsel %vm277_vm1, %v1479_v7, 0.0  ;;  %v279_v12 = vsel %vm277_vm1, %v1482_v8, 0.0  ;;  %987 = vmatpush3.bf16.msra.mxu0 %v1476_v5  ;;  %v1498_v14 = vld [vmem:[%s1460_s28 + $0x20] sm:$0xff]  ;;  %v281_v16 = vsel %vm277_vm1, %v1485_v9, 0.0  ;;  %v1506_v18 = vld [vmem:[%s1460_s28 + $0x28] sm:$0xff] }
  0x6d   : > { %v280_v15 = vadd.f32 %v279_v12, %v278_v11  ;;  %988 = vmatprep.subr.bf16.mxu0 %v1246_v0  ;;  %v283_v17 = vsel %vm277_vm1, %v1488_v10, 0.0  ;;  %v285_v20 = vsel %vm277_vm1, %v1498_v14, 0.0  ;;  %v1512_v21 = vld [vmem:[%s1460_s28 + $0x30] sm:$0xff]  ;;  %v287_v23 = vsel %vm277_vm1, %v1506_v18, 0.0  ;;  %v1518_v24 = vld [vmem:[%s1460_s28 + $0x38] sm:$0xff]  ;;  %v1523_v27 = vld [vmem:[%s1460_s28 + $0x40] sm:$0xff] }
  0x6e   : > { %v289_v26 = vsel %vm277_vm1, %v1512_v21, 0.0  ;;  %v291_v29 = vsel %vm277_vm1, %v1518_v24, 0.0  ;;  %v424_v30 = vld [vmem:[#allocation7] sm:$0xff]  ;;  %v425_v31 = vld [vmem:[#allocation7 + $0x8] sm:$0xff]  ;;  %v426_v32 = vld [vmem:[#allocation7 + $0x10] sm:$0xff]  ;;  %v293_v37 = vsel %vm277_vm1, %v1523_v27, 0.0 }
  0x6f   : > { %v282_v19 = vadd.f32 %v281_v16, %v280_v15  ;;  %v1528_v33 = vld [vmem:[%s1460_s28 + $0x48] sm:$0xff]  ;;  %v1530_v35 = vpack.c.bf16 %v425_v31, %v424_v30  ;;  %v427_v36 = vld [vmem:[#allocation7 + $0x18] sm:$0xff]  ;;  %v1535_v38 = vld [vmem:[%s1460_s28 + $0x50] sm:$0xff]  ;;  %s810_s6 = sshll.u32 %s244_s30, 4  ;;  %s797_s20 = scalar_lea.sflag [#allocation4], %s1456_s8  ;;  %s1778_s6 = int_to_ptr.vmem [resolvable:$true] %s810_s6 }
  0x70   : > { %990 = vmatpush3.bf16.msra.mxu0 %v1495_v13  ;;  %v1538_v40 = vpack.c.bf16 %v427_v36, %v426_v32  ;;  %v295_v41 = vsel %vm277_vm1, %v1528_v33, 0.0  ;;  %v1544_v42 = vld [vmem:[%s1460_s28 + $0x58] sm:$0xff]  ;;  %v297_v44 = vsel %vm277_vm1, %v1535_v38, 0.0  ;;  %v1549_v45 = vld [vmem:[%s1460_s28 + $0x60] sm:$0xff]  ;;  %v1556_v48 = vld [vmem:[%s1460_s28 + $0x68] sm:$0xff]  ;;  %s1169_s29 = scalar_lea.vmem %s1778_s6, 32 }
  0x71   : > { %v284_v22 = vadd.f32 %v283_v17, %v282_v19  ;;  %997 = vmatprep.subr.bf16.mxu0 %v1246_v0  ;;  %993 = vmatpush3.bf16.msra.mxu1 %v1530_v35  ;;  %v299_v47 = vsel %vm277_vm1, %v1544_v42, 0.0  ;;  %v301_v50 = vsel %vm277_vm1, %v1549_v45, 0.0  ;;  %v1561_v51 = vld [vmem:[%s1460_s28 + $0x70] sm:$0xff]  ;;  %v303_v53 = vsel %vm277_vm1, %v1556_v48, 0.0  ;;  %v1566_v54 = vld [vmem:[%s1460_s28 + $0x78] sm:$0xff]  ;;  %v1571_v57 = vld [vmem:[%s1460_s28 + $0x80] sm:$0xff]  ;;  %p1170_p11 = scmp.ne.s32.totalorder %s1778_s6, %s1169_s29 }
  0x72   : > { %994 = vmatprep.subr.bf16.mxu1 %v1246_v0  ;;  %v305_v56 = vsel %vm277_vm1, %v1561_v51, 0.0  ;;  %v307_v59 = vsel %vm277_vm1, %v1566_v54, 0.0  ;;  %v1576_v60 = vld [vmem:[%s1460_s28 + $0x88] sm:$0xff]  ;;  %v309_v62 = vsel %vm277_vm1, %v1571_v57, 0.0  ;;  %v1581_v63 = vld [vmem:[%s1460_s28 + $0x90] sm:$0xff]  ;;  %v1586_v4 = vld [vmem:[%s1460_s28 + $0x98] sm:$0xff] }
  0x73   : > { %v286_v25 = vadd.f32 %v285_v20, %v284_v22  ;;  %v311_v3 = vsel %vm277_vm1, %v1576_v60, 0.0  ;;  %v313_v11 = vsel %vm277_vm1, %v1581_v63, 0.0  ;;  %v1591_v12 = vld [vmem:[%s1460_s28 + $0xa0] sm:$0xff]  ;;  %v315_v16 = vsel %vm277_vm1, %v1586_v4, 0.0  ;;  %v1596_v17 = vld [vmem:[%s1460_s28 + $0xa8] sm:$0xff]  ;;  %v1601_v22 = vld [vmem:[%s1460_s28 + $0xb0] sm:$0xff] }
  0x74   : > { %v317_v20 = vsel %vm277_vm1, %v1591_v12, 0.0  ;;  %v1611_v30 = vld [vmem:[%s1460_s28 + $0xc0] sm:$0xff]  ;;  %p1838_p0 = scmp.ne.s32.totalorder %s1833_s13, 0  ;;  %s1249_s19 = smov [#allocation8]  }
  0x75   : > { %v288_v28 = vadd.f32 %v287_v23, %v286_v25  ;;  %996 = vmatpush3.bf16.msra.mxu1 %v1538_v40  ;;  %v319_v25 = vsel %vm277_vm1, %v1596_v17, 0.0  ;;  %s1173_s5 = sshll.u32 %s1249_s19, 4  ;;  %s1174_s5 = int_to_ptr.vmem [resolvable:$false] %s1173_s5 }
  0x76   : > { %1003 = vmatprep.subr.bf16.mxu1 %v1246_v0  ;;  %p1171_p2 = pnand %p1170_p11, %p1838_p0  ;;  %s1175_s9 = scalar_lea.vmem %s1174_s5, 64 }
  0x77   : > { %v290_v34 = vadd.f32 %v289_v26, %v288_v28  ;;  %v1606_v26 = vld [vmem:[%s1460_s28 + $0xb8] sm:$0xff]  ;;  %p1176_p7 = scmp.lt.s32.totalorder %s1778_s6, %s1174_s5  ;;  %p1177_p9 = scmp.lt.s32.totalorder %s1175_s9, %s1169_s29 }
  0x78   : > { %v323_v32 = vsel %vm277_vm1, %v1606_v26, 0.0  ;;  %p1172_p3 = pneg %p1171_p2 }
  0x79   : > { %v292_v39 = vadd.f32 %v291_v29, %v290_v34  ;;  %v321_v29 = vsel %vm277_vm1, %v1601_v22, 0.0  ;;  %v1616_v34 = vld [vmem:[%s1460_s28 + $0xc8] sm:$0xff]  ;;  %p1178_p12 = por %p1177_p9, %p1176_p7 }
  0x7b   : > { %v294_v43 = vadd.f32 %v293_v37, %v292_v39  ;;  %v325_v37 = vsel %vm277_vm1, %v1611_v30, 0.0  ;;  %v1621_v39 = vld [vmem:[%s1460_s28 + $0xd0] sm:$0xff]  ;;  %p1179_p1 = pnand %p1178_p12, %p1172_p3 }
  0x7d   : > { %v296_v46 = vadd.f32 %v295_v41, %v294_v43  ;;  %v327_v43 = vsel %vm277_vm1, %v1616_v34, 0.0 }
  0x7f   : > { %v298_v49 = vadd.f32 %v297_v44, %v296_v46  ;;  %v1626_v44 = vld [vmem:[%s1460_s28 + $0xd8] sm:$0xff] }
  0x81   : > { %v300_v52 = vadd.f32 %v299_v47, %v298_v49  ;;  %v329_v47 = vsel %vm277_vm1, %v1621_v39, 0.0  ;;  %v1631_v49 = vld [vmem:[%s1460_s28 + $0xe0] sm:$0xff] }
  0x83   : > { %v302_v55 = vadd.f32 %v301_v50, %v300_v52  ;;  %v331_v52 = vsel %vm277_vm1, %v1626_v44, 0.0 }
  0x85   : > { %v304_v58 = vadd.f32 %v303_v53, %v302_v55  ;;  %v1636_v53 = vld [vmem:[%s1460_s28 + $0xe8] sm:$0xff] }
  0x87   : > { %v306_v61 = vadd.f32 %v305_v56, %v304_v58  ;;  %v333_v56 = vsel %vm277_vm1, %v1631_v49, 0.0  ;;  %v1641_v58 = vld [vmem:[%s1460_s28 + $0xf0] sm:$0xff] }
  0x89   : > { %v308_v2 = vadd.f32 %v307_v59, %v306_v61  ;;  %v335_v61 = vsel %vm277_vm1, %v1636_v53, 0.0 }
  0x8b   : > { %v310_v6 = vadd.f32 %v309_v62, %v308_v2  ;;  %v1646_v62 = vld [vmem:[%s1460_s28 + $0xf8] sm:$0xff] }
  0x8d   : > { %v312_v15 = vadd.f32 %v311_v3, %v310_v6  ;;  %v337_v3 = vsel %vm277_vm1, %v1641_v58, 0.0 }
  0x8f   : > { %v314_v19 = vadd.f32 %v313_v11, %v312_v15  ;;  %v339_v11 = vsel %vm277_vm1, %v1646_v62, 0.0 }
  0x91   : > { %v316_v23 = vadd.f32 %v315_v16, %v314_v19 }
  0x93   : > { %v318_v28 = vadd.f32 %v317_v20, %v316_v23 }
  0x95   : > { %v320_v31 = vadd.f32 %v319_v25, %v318_v28 }
  0x97   : > { %v322_v36 = vadd.f32 %v321_v29, %v320_v31 }
  0x99   : > { %v324_v41 = vadd.f32 %v323_v32, %v322_v36 }
  0x9b   : > { %v326_v46 = vadd.f32 %v325_v37, %v324_v41 }
  0x9d   : > { %v328_v50 = vadd.f32 %v327_v43, %v326_v46 }
  0x9f   : > { %v330_v55 = vadd.f32 %v329_v47, %v328_v50 }
  0xa1   : > { %v332_v59 = vadd.f32 %v331_v52, %v330_v55 }
  0xa3   : > { %v334_v2 = vadd.f32 %v333_v56, %v332_v59 }
  0xa5   : > { %v336_v6 = vadd.f32 %v335_v61, %v334_v2 }
  0xa7   : > { %v338_v15 = vadd.f32 %v337_v3, %v336_v6 }
  0xa9   : > { %v340_v16 = vadd.f32 %v339_v11, %v338_v15 }
  0xab   : > { %v341_v19 = vrot.slane %v340_v16, 4 }
  0xad   : > { %v342_v20 = vadd.f32 %v341_v19, %v340_v16 }
  0xaf   : > { %v343_v23 = vrot.slane %v342_v20, 2 }
  0xb1   : > { %v344_v25 = vadd.f32 %v343_v23, %v342_v20 }
  0xb3   : > { %v345_v28 = vrot.slane %v344_v25, 1 }
  0xb5   : > { %v346_v29 = vadd.f32 %v345_v28, %v344_v25 }
  0xb7   : > { %950 = vmatmul.mubr.msk.f32.vlgmr.msra.gmra.mrb[0].mxu0 %vm277_vm1, %v346_v29 }
  0xb8   : > { %999 = vmatpush3.bf16.msra.mxu0 %v1476_v5  ;;  %971 = vmatprep.mubr.msk.f32.mxu0 %vm1247_vm0, %v1248_v1  ;;  %v501_v5 = vlaneseq }
  0xb9   : > { %1000 = vmatprep.subr.bf16.mxu0 %v1246_v0 }
  0xba   : > { %v502_v36 = vshrl.u32 %v501_v5, 7 }
  0xbc   : > { %1002 = vmatpush3.bf16.msra.mxu0 %v1495_v13  ;;  %v503_v43 = vsub.s32 0, %v502_v36 }
 0x18a   : > { %v420_v31 = vpop.f32.mrb[0].mxu0 }
 0x18b   : > { %v951_v32 = vpop.f32.mrb[1].mxu0  ;;  %961 = vmatmul.mubr.msk.f32.vlgmr.msra.gmra.mrb[0].mxu1 %vm277_vm1, %v420_v31 }
 0x18c   : > { %1005 = vmatpush3.bf16.msra.mxu1 %v1530_v35  ;;  %982 = vmatprep.mubr.msk.f32.mxu1 %vm1247_vm0, %v1248_v1 }
 0x18d   : > { %1006 = vmatprep.subr.bf16.mxu1 %v1246_v0 }
 0x190   : > { %1008 = vmatpush3.bf16.msra.mxu1 %v1538_v40 }
 0x25e   : > { %v1664_v37 = vpop.f32.mrb[0].mxu1 }
 0x25f   : > { %v962_v41 = vpop.f32.mrb[1].mxu1  ;;  %v1667_v13 = vrot.slane %v1664_v37, %v503_v43 }
 0x261   : > { %v505_v46 = vsub.f32 %v1479_v7, %v1667_v13  ;;  %v506_v35 = vsub.f32 %v1482_v8, %v1667_v13  ;;  %v507_v0 = vsub.f32 %v1485_v9, %v1667_v13  ;;  %v508_v1 = vsub.f32 %v1488_v10, %v1667_v13 }
 0x262   : > { %v509_v50 = vsub.f32 %v1498_v14, %v1667_v13  ;;  %v510_v55 = vsub.f32 %v1506_v18, %v1667_v13  ;;  %v511_v9 = vsub.f32 %v1512_v21, %v1667_v13  ;;  %v512_v14 = vsub.f32 %v1518_v24, %v1667_v13 }
 0x263   : > { %v537_v40 = vmul.f32 %v505_v46, %v505_v46  ;;  %v538_v47 = vmul.f32 %v506_v35, %v506_v35  ;;  %v539_v52 = vmul.f32 %v507_v0, %v507_v0  ;;  %v540_v56 = vmul.f32 %v508_v1, %v508_v1 }
 0x264   : > { %v541_v61 = vmul.f32 %v509_v50, %v509_v50  ;;  %v542_v3 = vmul.f32 %v510_v55, %v510_v55  ;;  %v513_v11 = vsub.f32 %v1523_v27, %v1667_v13  ;;  %v543_v15 = vmul.f32 %v511_v9, %v511_v9 }
 0x265   : > { %v569_v7 = vsel %vm277_vm1, %v537_v40, 0.0  ;;  %v570_v8 = vsel %vm277_vm1, %v538_v47, 0.0  ;;  %v572_v10 = vsel %vm277_vm1, %v539_v52, 0.0  ;;  %v574_v6 = vsel %vm277_vm1, %v540_v56, 0.0 }
 0x266   : > { %v571_v59 = vadd.f32 %v570_v8, %v569_v7  ;;  %v576_v16 = vsel %vm277_vm1, %v541_v61, 0.0  ;;  %v514_v21 = vsub.f32 %v1528_v33, %v1667_v13  ;;  %v544_v20 = vmul.f32 %v512_v14, %v512_v14 }
 0x267   : > { %v578_v23 = vsel %vm277_vm1, %v542_v3, 0.0  ;;  %v515_v24 = vsub.f32 %v1535_v38, %v1667_v13  ;;  %v545_v28 = vmul.f32 %v513_v11, %v513_v11  ;;  %v580_v29 = vsel %vm277_vm1, %v543_v15, 0.0 }
 0x268   : > { %v573_v2 = vadd.f32 %v572_v10, %v571_v59  ;;  %v516_v27 = vsub.f32 %v1544_v42, %v1667_v13  ;;  %v546_v32 = vmul.f32 %v514_v21, %v514_v21  ;;  %v582_v5 = vsel %vm277_vm1, %v544_v20, 0.0 }
 0x269   : > { %v517_v33 = vsub.f32 %v1549_v45, %v1667_v13  ;;  %v547_v41 = vmul.f32 %v515_v24, %v515_v24  ;;  %v584_v43 = vsel %vm277_vm1, %v545_v28, 0.0  ;;  %v518_v38 = vsub.f32 %v1556_v48, %v1667_v13 }
 0x26a   : > { %v575_v18 = vadd.f32 %v574_v6, %v573_v2  ;;  %v548_v35 = vmul.f32 %v516_v27, %v516_v27  ;;  %v586_v0 = vsel %vm277_vm1, %v546_v32, 0.0  ;;  %v519_v42 = vsub.f32 %v1561_v51, %v1667_v13 }
 0x26b   : > { %v549_v40 = vmul.f32 %v517_v33, %v517_v33  ;;  %v588_v47 = vsel %vm277_vm1, %v547_v41, 0.0  ;;  %v520_v45 = vsub.f32 %v1566_v54, %v1667_v13  ;;  %v550_v52 = vmul.f32 %v518_v38, %v518_v38 }
 0x26c   : > { %v577_v19 = vadd.f32 %v576_v16, %v575_v18  ;;  %v590_v55 = vsel %vm277_vm1, %v548_v35, 0.0  ;;  %v521_v48 = vsub.f32 %v1571_v57, %v1667_v13  ;;  %v551_v7 = vmul.f32 %v519_v42, %v519_v42 }
 0x26d   : > { %v592_v8 = vsel %vm277_vm1, %v549_v40, 0.0  ;;  %v522_v51 = vsub.f32 %v1576_v60, %v1667_v13  ;;  %v552_v9 = vmul.f32 %v520_v45, %v520_v45  ;;  %v594_v61 = vsel %vm277_vm1, %v550_v52, 0.0 }
 0x26e   : > { %v579_v25 = vadd.f32 %v578_v23, %v577_v19  ;;  %v523_v54 = vsub.f32 %v1581_v63, %v1667_v13  ;;  %v553_v2 = vmul.f32 %v521_v48, %v521_v48  ;;  %v596_v14 = vsel %vm277_vm1, %v551_v7, 0.0 }
 0x26f   : > { %v524_v57 = vsub.f32 %v1586_v4, %v1667_v13  ;;  %v554_v6 = vmul.f32 %v522_v51, %v522_v51  ;;  %v598_v18 = vsel %vm277_vm1, %v552_v9, 0.0  ;;  %v525_v60 = vsub.f32 %v1591_v12, %v1667_v13 }
 0x270   : > { %v581_v31 = vadd.f32 %v580_v29, %v579_v25  ;;  %v555_v15 = vmul.f32 %v523_v54, %v523_v54  ;;  %v600_v16 = vsel %vm277_vm1, %v553_v2, 0.0  ;;  %v526_v63 = vsub.f32 %v1596_v17, %v1667_v13 }
 0x271   : > { %v556_v21 = vmul.f32 %v524_v57, %v524_v57  ;;  %v602_v20 = vsel %vm277_vm1, %v554_v6, 0.0  ;;  %v527_v4 = vsub.f32 %v1601_v22, %v1667_v13  ;;  %v557_v25 = vmul.f32 %v525_v60, %v525_v60 }
 0x272   : > { %v583_v36 = vadd.f32 %v582_v5, %v581_v31  ;;  %v604_v24 = vsel %vm277_vm1, %v555_v15, 0.0  ;;  %v528_v12 = vsub.f32 %v1606_v26, %v1667_v13  ;;  %v558_v29 = vmul.f32 %v526_v63, %v526_v63 }
 0x273   : > { %v606_v31 = vsel %vm277_vm1, %v556_v21, 0.0  ;;  %v529_v17 = vsub.f32 %v1611_v30, %v1667_v13  ;;  %v559_v32 = vmul.f32 %v527_v4, %v527_v4  ;;  %v608_v5 = vsel %vm277_vm1, %v557_v25, 0.0  ;;  %v785_v21 = vld [vmem:[%s1823_s3] sm:$0x3] }
 0x274   : > { %v585_v46 = vadd.f32 %v584_v43, %v583_v36  ;;  %v530_v22 = vsub.f32 %v1616_v34, %v1667_v13  ;;  %v560_v33 = vmul.f32 %v528_v12, %v528_v12  ;;  %v610_v41 = vsel %vm277_vm1, %v558_v29, 0.0 }
 0x275   : > { %v531_v26 = vsub.f32 %v1621_v39, %v1667_v13  ;;  %v612_v38 = vsel %vm277_vm1, %v559_v32, 0.0  ;;  %v532_v30 = vsub.f32 %v1626_v44, %v1667_v13  ;;  %v533_v34 = vsub.f32 %v1631_v49, %v1667_v13 }
 0x276   : > { %v587_v1 = vadd.f32 %v586_v0, %v585_v46  ;;  %v561_v46 = vmul.f32 %v529_v17, %v529_v17  ;;  %v562_v0 = vmul.f32 %v530_v22, %v530_v22  ;;  %v534_v39 = vsub.f32 %v1636_v53, %v1667_v13 }
 0x277   : > { %v563_v40 = vmul.f32 %v531_v26, %v531_v26  ;;  %v564_v45 = vmul.f32 %v532_v30, %v532_v30  ;;  %v535_v44 = vsub.f32 %v1641_v58, %v1667_v13  ;;  %v536_v49 = vsub.f32 %v1646_v62, %v1667_v13 }
 0x278   : > { %v589_v50 = vadd.f32 %v588_v47, %v587_v1  ;;  %v614_v1 = vsel %vm277_vm1, %v560_v33, 0.0  ;;  %v616_v47 = vsel %vm277_vm1, %v561_v46, 0.0  ;;  %v618_v52 = vsel %vm277_vm1, %v562_v0, 0.0 }
 0x279   : > { %v620_v48 = vsel %vm277_vm1, %v563_v40, 0.0  ;;  %v567_v9 = vmul.f32 %v535_v44, %v535_v44 }
 0x27a   : > { %v591_v56 = vadd.f32 %v590_v55, %v589_v50 }
 0x27b   : > { %v628_v58 = vsel %vm277_vm1, %v567_v9, 0.0 }
 0x27c   : > { %v593_v59 = vadd.f32 %v592_v8, %v591_v56  ;;  %v565_v56 = vmul.f32 %v533_v34, %v533_v34  ;;  %v566_v8 = vmul.f32 %v534_v39, %v534_v39 }
 0x27e   : > { %v595_v10 = vadd.f32 %v594_v61, %v593_v59  ;;  %v622_v59 = vsel %vm277_vm1, %v564_v45, 0.0  ;;  %v624_v53 = vsel %vm277_vm1, %v565_v56, 0.0  ;;  %v626_v54 = vsel %vm277_vm1, %v566_v8, 0.0 }
 0x280   : > { %v597_v3 = vadd.f32 %v596_v14, %v595_v10  ;;  %v568_v10 = vmul.f32 %v536_v49, %v536_v49 }
 0x282   : > { %v599_v11 = vadd.f32 %v598_v18, %v597_v3  ;;  %v630_v3 = vsel %vm277_vm1, %v568_v10, 0.0 }
 0x284   : > { %v601_v19 = vadd.f32 %v600_v16, %v599_v11 }
 0x286   : > { %v603_v23 = vadd.f32 %v602_v20, %v601_v19 }
 0x288   : > { %v605_v28 = vadd.f32 %v604_v24, %v603_v23 }
 0x28a   : > { %v607_v27 = vadd.f32 %v606_v31, %v605_v28 }
 0x28c   : > { %v609_v36 = vadd.f32 %v608_v5, %v607_v27 }
 0x28e   : > { %v611_v43 = vadd.f32 %v610_v41, %v609_v36 }
 0x290   : > { %v613_v35 = vadd.f32 %v612_v38, %v611_v43 }
 0x292   : > { %v615_v42 = vadd.f32 %v614_v1, %v613_v35 }
 0x294   : > { %v617_v50 = vadd.f32 %v616_v47, %v615_v42 }
 0x296   : > { %v619_v55 = vadd.f32 %v618_v52, %v617_v50 }
 0x298   : > { %v621_v7 = vadd.f32 %v620_v48, %v619_v55 }
 0x29a   : > { %v623_v51 = vadd.f32 %v622_v59, %v621_v7 }
 0x29c   : > { %v625_v61 = vadd.f32 %v624_v53, %v623_v51 }
 0x29e   : > { %v627_v2 = vadd.f32 %v626_v54, %v625_v61 }
 0x2a0   : > { %v629_v14 = vadd.f32 %v628_v58, %v627_v2 }
 0x2a2   : > { %v631_v57 = vadd.f32 %v630_v3, %v629_v14 }
 0x2a4   : > { %v632_v62 = vrot.slane %v631_v57, 4 }
 0x2a6   : > { %v633_v13 = vadd.f32 %v632_v62, %v631_v57 }
 0x2a8   : > { %v634_v6 = vrot.slane %v633_v13, 2 }
 0x2aa   : > { %v635_v18 = vadd.f32 %v634_v6, %v633_v13 }
 0x2ac   : > { %v636_v11 = vrot.slane %v635_v18, 1 }
 0x2ae   : > { %v637_v60 = vadd.f32 %v636_v11, %v635_v18 }
 0x2b0   : > { %972 = vmatmul.mubr.msk.f32.vlgmr.msra.gmra.mrb[2].mxu0 %vm277_vm1, %v637_v60 }
 0x383   : > { %v707_v15 = vpop.f32.mrb[2].mxu0 }
 0x384   : > { %v708_v16 = vadd.f32 1e-05, %v707_v15  ;;  %v973_v19 = vpop.f32.mrb[3].mxu0 }
 0x386   : > { %1081 = vrsqrt.f32 %v708_v16 }
 0x390   : > { %v1082_v63 = vpop.eup %1081 }
 0x391   : > { %983 = vmatmul.mubr.msk.f32.vlgmr.msra.gmra.mrb[2].mxu1 %vm277_vm1, %v1082_v63 }
 0x464   : > { %v781_v20 = vpop.f32.mrb[2].mxu1 }
 0x465   : > { %v786_v23 = vmul.f32 %v785_v21, %v781_v20  ;;  %v984_v4 = vpop.f32.mrb[3].mxu1 }
 0x467   : > { %v787_v25 = vmul.f32 %v786_v23, %v1664_v37 }
 0x469   : > { %v789_v24 = vrot.slane %v787_v25, 7 }
 0x46b   : > { %v791_v28 = vsub.f32 %v785_v21, %v789_v24 }
 0x46d   : > { %v793_v12 = vsel %vm792_vm2, %v786_v23, %v791_v28 }
 0x46e   : > { %795 = vst.msk [vmem:[%s244_s30] sm:$0x3] %vm794_vm3, %v793_v12 }
 0x46f   : > { %1182 = shalt.err (!%p1179_p1)
}
 0x470   : > { %s1183_s8 = scalar_lea.hbm %s1776_s27, 32  ;;  %s1187_s28 = scalar_lea.hbm %s1824_s4, 64 }
 0x471   : > { %p1184_p13 = scmp.ne.s32.totalorder %s1776_s27, %s1183_s8  ;;  %p1188_p4 = scmp.lt.u32.totalorder %s1776_s27, %s1824_s4 }
 0x472   : > { %p1189_p5 = scmp.lt.u32.totalorder %s1187_s28, %s1183_s8  ;;  %p1191_p11 = scmp.lt.u32.totalorder %s1183_s8, %s1776_s27 }
 0x473   : > { %p1185_p6 = pnand %p1184_p13, %p1838_p0 }
 0x474   : > { %p1190_p8 = por %p1189_p5, %p1188_p4 }
 0x475   : > { %p1186_p10 = pneg %p1185_p6 }
 0x476   : > { %p1192_p2 = por %p1191_p11, %p1190_p8 }
 0x478   : > { %p1193_p3 = pnand %p1192_p2, %p1186_p10 }
 0x47a   : > { %1196 = shalt.err (!%p1193_p3)
}
 0x47b   : > { %1019 = dma.vmem_to_hbm [thread:$0]  (%p1838_p0), %s1778_s6, 32, %s1776_s27, %s797_s20  }
 0x47c PF: > { %s822_s11 = sand.u32 1, %s1227_s15   ;;  %p1839_p7 = scmp.ne.s32.totalorder %s1829_s22, 0 }
 0x47d   : > { %p1840_p9 = scmp.ge.s32.totalorder %s1239_s18, 2  ;;  %s823_s12 = scalar_lea.sflag [#allocation4], %s822_s11 }
 0x47f   : > { %p1033_p12 = pnand %p1840_p9, %p1839_p7 }
 0x481   : > { %1222 = dma.done.wait (!%p1033_p12), %s823_s12, 32  }
 0x482   : > { %1224 = vsyncadd (!%p1033_p12), %s823_s12, 4294967264  ;;  %p18_p1 = scmp.ge.s32.totalorder %s1391_s26, 4   ;;  %s1841_s15 = smov %s1231_s16 }
 0x483   : > { %s1842_s16 = smov %s1235_s17  ;;  %s1843_s17 = smov %s1407_s14 }
 0x484   : > { %s1844_s18 = smov %s1391_s26  ;;  %20 = sbr.rel (!%p18_p1) target bundleno = 6 (0x6), region = 89 }
 0x48b   :  { %828 = vsyncpa [#allocation3], 1 }
 0x48c   :  { %830 = vsyncpa [#allocation3 + $0x1], 1 }
 0x48d   :  { %831 = vsyncpa [#allocation6], 1 }
 0x48e   :  { %832 = vsyncpa [#allocation4], 1 }
 0x48f   :  { %834 = vsyncpa [#allocation4 + $0x1], 1 }

</bundles_post_ra>
